<compile_context>
chip_gen: v5e
topology: v5e:2x2
jax: 0.10.0
libtpu: 0.0.40
codegen_flags: <defaults>
</compile_context>

<pallas_src>
import functools

import jax
import jax.numpy as jnp
from jax.experimental import pallas as pl
from jax.experimental.pallas import tpu as pltpu


def _taps(src_padded, pad, W, HW, keep_left, keep_right):
    """9 shifted (C, HW) views of a row-zero-padded flat image.

    src_padded: (C, HW + 2*pad) with the real image at lane offset `pad` and zeros
    on both sides (covers dy = +-1 row padding).  Column padding (dx = +-1) is
    emulated by zeroing the wrapped edge lanes with `keep_left` / `keep_right`.
    Tap order is (dy, dx) row-major, i.e. k = (dy+1)*3 + (dx+1).
    """
    slabs = []
    for dy in (-1, 0, 1):
        for dx in (-1, 0, 1):
            s = pad + dy * W + dx                      # static lane offset, >= 0
            slab = src_padded[:, s:s + HW]
            if dx == -1:
                slab = jnp.where(keep_left, slab, 0.0)
            elif dx == 1:
                slab = jnp.where(keep_right, slab, 0.0)
            slabs.append(slab)
    return slabs


def _transmission_kernel(x_ref, w1_ref, b1_ref, w2_ref, b2_ref, o_ref, p2_ref, *, H, W):
    HW = H * W
    pad = W + 1
    Cin = x_ref.shape[1]
    Cmid = w1_ref.shape[0]

    def edge_keep(C):
        col = jax.lax.broadcasted_iota(jnp.int32, (C, HW), 1) % W
        return col != 0, col != (W - 1)

    # ---- conv1: im2col (9*Cin, HW) in-register + one MXU matmul -> (Cmid, HW) ----
    xf = x_ref[0]                                       # (Cin, HW), lane-dense load
    zx = jnp.zeros((Cin, pad), jnp.float32)
    xrp = jnp.concatenate([zx, xf, zx], axis=1)         # row-zero-padded flat image
    kl1, kr1 = edge_keep(Cin)
    p1 = jnp.concatenate(_taps(xrp, pad, W, HW, kl1, kr1), axis=0)   # (9*Cin, HW)
    h = jnp.dot(w1_ref[...], p1, preferred_element_type=jnp.float32) + b1_ref[...]
    h = jnp.where(h > 0, h, 0.1 * h)                    # LeakyReLU(0.1)

    # ---- conv2: im2col into VMEM scratch (9*Cmid, HW) + one MXU matmul ----
    zh = jnp.zeros((Cmid, pad), jnp.float32)
    hrp = jnp.concatenate([zh, h, zh], axis=1)          # (Cmid, HW + 2*pad)
    kl2, kr2 = edge_keep(Cmid)
    for k, slab in enumerate(_taps(hrp, pad, W, HW, kl2, kr2)):
        # Cmid is a multiple of 8 -> aligned, full-lane sublane-block stores.
        p2_ref[k * Cmid:(k + 1) * Cmid, :] = slab
    y = jnp.dot(w2_ref[...], p2_ref[...], preferred_element_type=jnp.float32) + b2_ref[...]

    # ---- residual: out = x + tanh(conv2(leaky_relu(conv1(x)))) ----
    o_ref[0] = xf + jnp.tanh(y)                         # (Cout, HW), lane-dense store


def transmission_simulator(x_nchw, w1_oihw, b1, w2_oihw, b2):
    """x_nchw: (N, 3, H, W) f32.  w1/w2 in PyTorch OIHW layout, b1/b2 1-D."""
    N, Cin, H, W = x_nchw.shape
    Cmid = w1_oihw.shape[0]
    Cout = w2_oihw.shape[0]
    HW = H * W

    # (O, I, KH, KW) -> (O, KH*KW*I): rows match the tap-major / channel-minor im2col order.
    w1m = jnp.transpose(w1_oihw, (0, 2, 3, 1)).reshape(Cmid, 9 * Cin).astype(jnp.float32)
    w2m = jnp.transpose(w2_oihw, (0, 2, 3, 1)).reshape(Cout, 9 * Cmid).astype(jnp.float32)
    b1m = b1.reshape(Cmid, 1).astype(jnp.float32)
    b2m = b2.reshape(Cout, 1).astype(jnp.float32)
    x_flat = x_nchw.reshape(N, Cin, HW).astype(jnp.float32)   # free contiguous reshape

    kernel = functools.partial(_transmission_kernel, H=H, W=W)

    out_flat = pl.pallas_call(
        kernel,
        out_shape=jax.ShapeDtypeStruct((N, Cout, HW), jnp.float32),
        grid_spec=pltpu.PrefetchScalarGridSpec(
            num_scalar_prefetch=0,
            grid=(N,),
            in_specs=[
                pl.BlockSpec((1, Cin, HW), lambda n: (n, 0, 0)),
                pl.BlockSpec((Cmid, 9 * Cin), lambda n: (0, 0)),
                pl.BlockSpec((Cmid, 1), lambda n: (0, 0)),
                pl.BlockSpec((Cout, 9 * Cmid), lambda n: (0, 0)),
                pl.BlockSpec((Cout, 1), lambda n: (0, 0)),
            ],
            out_specs=pl.BlockSpec((1, Cout, HW), lambda n: (n, 0, 0)),
            scratch_shapes=[pltpu.VMEM((9 * Cmid, HW), jnp.float32)],
        ),
        compiler_params=pltpu.CompilerParams(
            dimension_semantics=("parallel",)),   # batch is independent (v7x: 2 TCs)
    )(x_flat, w1m, b1m, w2m, b2m)

    # Already channel-major: only a free reshape back to NCHW.
    return out_flat.reshape(N, Cout, H, W)


if __name__ == "__main__":
    key = jax.random.PRNGKey(0)
    k1, k2, k3, k4, k5 = jax.random.split(key, 5)

    N, Cin, H, W = 2, 3, 16, 16
    Cmid, Cout = 32, 3

    x = jax.random.normal(k1, (N, Cin, H, W), jnp.float32)
    # Deterministic synthetic parameters in PyTorch layout:
    # nn.Conv2d(3, 32, 3) and nn.Conv2d(32, 3, 3).
    w1 = jax.random.normal(k2, (Cmid, Cin, 3, 3), jnp.float32) * 0.1
    b1 = jax.random.normal(k3, (Cmid,), jnp.float32) * 0.1
    w2 = jax.random.normal(k4, (Cout, Cmid, 3, 3), jnp.float32) * 0.1
    b2 = jax.random.normal(k5, (Cout,), jnp.float32) * 0.1

    out = transmission_simulator(x, w1, b1, w2, b2)
    out = jax.block_until_ready(out)

    # Pure-JAX/XLA reference mirroring the PyTorch NCHW forward (sanity check).
    dn = ("NCHW", "OIHW", "NCHW")
    hh = jax.lax.conv_general_dilated(x, w1, (1, 1), ((1, 1), (1, 1)),
                                      dimension_numbers=dn)
    hh = hh + b1[None, :, None, None]
    hh = jnp.where(hh > 0, hh, 0.1 * hh)
    yy = jax.lax.conv_general_dilated(hh, w2, (1, 1), ((1, 1), (1, 1)),
                                      dimension_numbers=dn)
    ref = x + jnp.tanh(yy + b2[None, :, None, None])

    assert out.shape == (N, Cout, H, W) and out.dtype == jnp.float32
    err = float(jnp.max(jnp.abs(out - ref)))
    assert err < 1e-3, f"max abs error too large: {err}"
    print("KERNEL_OK")
</pallas_src>

<mosaic_0001>
module attributes {stable_mosaic.version = 11 : i64} {
  func.func @_transmission_kernel(%arg0: i32, %arg1: memref<1x3x256xf32, #tpu.memory_space<vmem>>, %arg2: memref<32x27xf32, #tpu.memory_space<vmem>>, %arg3: memref<32x1xf32, #tpu.memory_space<vmem>>, %arg4: memref<3x288xf32, #tpu.memory_space<vmem>>, %arg5: memref<3x1xf32, #tpu.memory_space<vmem>>, %arg6: memref<1x3x256xf32, #tpu.memory_space<vmem>>, %arg7: memref<288x256xf32, #tpu.memory_space<vmem>>) attributes {dimension_semantics = [#tpu.dimension_semantics<parallel>], iteration_bounds = array<i64: 2>, scalar_prefetch = 0 : i64, scratch_operands = 1 : i64, tpu.core_type = #tpu.core_type<tc>, window_params = [{transform_indices = @transform_0, window_bounds = array<i64: 1, 3, 256>}, {pipeline_mode = #tpu.pipeline_mode<synchronous>, transform_indices = @transform_1, window_bounds = array<i64: 32, 27>}, {pipeline_mode = #tpu.pipeline_mode<synchronous>, transform_indices = @transform_2, window_bounds = array<i64: 32, 1>}, {pipeline_mode = #tpu.pipeline_mode<synchronous>, transform_indices = @transform_3, window_bounds = array<i64: 3, 288>}, {pipeline_mode = #tpu.pipeline_mode<synchronous>, transform_indices = @transform_4, window_bounds = array<i64: 3, 1>}, {transform_indices = @transform_5, window_bounds = array<i64: 1, 3, 256>}]} {
    %c0 = arith.constant 0 : index
    %c0_0 = arith.constant 0 : index
    %c0_1 = arith.constant 0 : index
    %0 = vector.load %arg1[%c0, %c0_0, %c0_1] : memref<1x3x256xf32, #tpu.memory_space<vmem>>, vector<1x3x256xf32>
    %1 = vector.shape_cast %0 : vector<1x3x256xf32> to vector<3x256xf32>
    %cst = arith.constant 0.000000e+00 : f32
    %2 = vector.broadcast %cst : f32 to vector<3x17xf32>
    %3 = tpu.concatenate %2, %1, %2 in 1 : vector<3x17xf32>, vector<3x256xf32>, vector<3x17xf32> -> vector<3x290xf32>
    %4 = tpu.iota {dimensions = array<i32: 1>} : vector<3x256xi32>
    %c16_i32 = arith.constant 16 : i32
    %c0_i32 = arith.constant 0 : i32
    %5 = arith.cmpi eq, %c16_i32, %c0_i32 : i32
    %c1_i32 = arith.constant 1 : i32
    %6 = arith.select %5, %c1_i32, %c16_i32 : i32
    %7 = vector.broadcast %6 : i32 to vector<3x256xi32>
    %8 = arith.remsi %4, %7 : vector<3x256xi32>
    %c0_i32_2 = arith.constant 0 : i32
    %9 = vector.broadcast %c0_i32_2 : i32 to vector<3x256xi32>
    %10 = arith.cmpi ne, %8, %9 : vector<3x256xi32>
    %c0_i32_3 = arith.constant 0 : i32
    %11 = vector.broadcast %c0_i32_3 : i32 to vector<3x256xi32>
    %12 = arith.cmpi slt, %8, %11 : vector<3x256xi32>
    %c0_i32_4 = arith.constant 0 : i32
    %13 = arith.cmpi slt, %6, %c0_i32_4 : i32
    %14 = vector.broadcast %13 : i1 to vector<3x256xi1>
    %15 = vector.broadcast %14 : vector<3x256xi1> to vector<3x256xi1>
    %16 = arith.xori %12, %15 : vector<3x256xi1>
    %17 = arith.andi %16, %10 : vector<3x256xi1>
    %18 = vector.broadcast %6 : i32 to vector<3x256xi32>
    %19 = arith.addi %8, %18 : vector<3x256xi32>
    %20 = arith.select %17, %19, %8 : vector<3x256xi1>, vector<3x256xi32>
    %c0_i32_5 = arith.constant 0 : i32
    %21 = vector.broadcast %c0_i32_5 : i32 to vector<3x256xi32>
    %22 = arith.cmpi ne, %20, %21 : vector<3x256xi32>
    %c15_i32 = arith.constant 15 : i32
    %23 = vector.broadcast %c15_i32 : i32 to vector<3x256xi32>
    %24 = arith.cmpi ne, %20, %23 : vector<3x256xi32>
    %25 = vector.extract_strided_slice %3 {offsets = [0, 0], sizes = [3, 256], strides = [1, 1]} : vector<3x290xf32> to vector<3x256xf32>
    %cst_6 = arith.constant 0.000000e+00 : f32
    %26 = vector.broadcast %cst_6 : f32 to vector<3x256xf32>
    %27 = arith.select %22, %25, %26 : vector<3x256xi1>, vector<3x256xf32>
    %28 = vector.extract_strided_slice %3 {offsets = [0, 1], sizes = [3, 256], strides = [1, 1]} : vector<3x290xf32> to vector<3x256xf32>
    %29 = vector.extract_strided_slice %3 {offsets = [0, 2], sizes = [3, 256], strides = [1, 1]} : vector<3x290xf32> to vector<3x256xf32>
    %cst_7 = arith.constant 0.000000e+00 : f32
    %30 = vector.broadcast %cst_7 : f32 to vector<3x256xf32>
    %31 = arith.select %24, %29, %30 : vector<3x256xi1>, vector<3x256xf32>
    %32 = vector.extract_strided_slice %3 {offsets = [0, 16], sizes = [3, 256], strides = [1, 1]} : vector<3x290xf32> to vector<3x256xf32>
    %cst_8 = arith.constant 0.000000e+00 : f32
    %33 = vector.broadcast %cst_8 : f32 to vector<3x256xf32>
    %34 = arith.select %22, %32, %33 : vector<3x256xi1>, vector<3x256xf32>
    %35 = vector.extract_strided_slice %3 {offsets = [0, 17], sizes = [3, 256], strides = [1, 1]} : vector<3x290xf32> to vector<3x256xf32>
    %36 = vector.extract_strided_slice %3 {offsets = [0, 18], sizes = [3, 256], strides = [1, 1]} : vector<3x290xf32> to vector<3x256xf32>
    %cst_9 = arith.constant 0.000000e+00 : f32
    %37 = vector.broadcast %cst_9 : f32 to vector<3x256xf32>
    %38 = arith.select %24, %36, %37 : vector<3x256xi1>, vector<3x256xf32>
    %39 = vector.extract_strided_slice %3 {offsets = [0, 32], sizes = [3, 256], strides = [1, 1]} : vector<3x290xf32> to vector<3x256xf32>
    %cst_10 = arith.constant 0.000000e+00 : f32
    %40 = vector.broadcast %cst_10 : f32 to vector<3x256xf32>
    %41 = arith.select %22, %39, %40 : vector<3x256xi1>, vector<3x256xf32>
    %42 = vector.extract_strided_slice %3 {offsets = [0, 33], sizes = [3, 256], strides = [1, 1]} : vector<3x290xf32> to vector<3x256xf32>
    %43 = vector.extract_strided_slice %3 {offsets = [0, 34], sizes = [3, 256], strides = [1, 1]} : vector<3x290xf32> to vector<3x256xf32>
    %cst_11 = arith.constant 0.000000e+00 : f32
    %44 = vector.broadcast %cst_11 : f32 to vector<3x256xf32>
    %45 = arith.select %24, %43, %44 : vector<3x256xi1>, vector<3x256xf32>
    %46 = tpu.concatenate %27, %28, %31, %34, %35, %38, %41, %42, %45 in 0 : vector<3x256xf32>, vector<3x256xf32>, vector<3x256xf32>, vector<3x256xf32>, vector<3x256xf32>, vector<3x256xf32>, vector<3x256xf32>, vector<3x256xf32>, vector<3x256xf32> -> vector<27x256xf32>
    %c0_12 = arith.constant 0 : index
    %c0_13 = arith.constant 0 : index
    %47 = vector.load %arg2[%c0_12, %c0_13] : memref<32x27xf32, #tpu.memory_space<vmem>>, vector<32x27xf32>
    %cst_14 = arith.constant dense<0.000000e+00> : vector<32x256xf32>
    %48 = tpu.matmul %47, %46, %cst_14 {dimension_numbers = #tpu.dot_dimension_numbers<[1], [0], [0], [1], [0, 0, 1, 1], [], []>} : vector<32x27xf32>, vector<27x256xf32>, vector<32x256xf32> -> vector<32x256xf32>
    %c0_15 = arith.constant 0 : index
    %c0_16 = arith.constant 0 : index
    %49 = vector.load %arg3[%c0_15, %c0_16] : memref<32x1xf32, #tpu.memory_space<vmem>>, vector<32x1xf32>
    %50 = vector.broadcast %49 : vector<32x1xf32> to vector<32x256xf32>
    %51 = arith.addf %48, %50 : vector<32x256xf32>
    %cst_17 = arith.constant 0.000000e+00 : f32
    %52 = vector.broadcast %cst_17 : f32 to vector<32x256xf32>
    %53 = arith.cmpf ogt, %51, %52 : vector<32x256xf32>
    %cst_18 = arith.constant 1.000000e-01 : f32
    %54 = vector.broadcast %cst_18 : f32 to vector<32x256xf32>
    %55 = arith.mulf %54, %51 : vector<32x256xf32>
    %56 = arith.select %53, %51, %55 : vector<32x256xi1>, vector<32x256xf32>
    %cst_19 = arith.constant 0.000000e+00 : f32
    %57 = vector.broadcast %cst_19 : f32 to vector<32x17xf32>
    %58 = tpu.concatenate %57, %56, %57 in 1 : vector<32x17xf32>, vector<32x256xf32>, vector<32x17xf32> -> vector<32x290xf32>
    %59 = tpu.iota {dimensions = array<i32: 1>} : vector<32x256xi32>
    %c16_i32_20 = arith.constant 16 : i32
    %c0_i32_21 = arith.constant 0 : i32
    %60 = arith.cmpi eq, %c16_i32_20, %c0_i32_21 : i32
    %c1_i32_22 = arith.constant 1 : i32
    %61 = arith.select %60, %c1_i32_22, %c16_i32_20 : i32
    %62 = vector.broadcast %61 : i32 to vector<32x256xi32>
    %63 = arith.remsi %59, %62 : vector<32x256xi32>
    %c0_i32_23 = arith.constant 0 : i32
    %64 = vector.broadcast %c0_i32_23 : i32 to vector<32x256xi32>
    %65 = arith.cmpi ne, %63, %64 : vector<32x256xi32>
    %c0_i32_24 = arith.constant 0 : i32
    %66 = vector.broadcast %c0_i32_24 : i32 to vector<32x256xi32>
    %67 = arith.cmpi slt, %63, %66 : vector<32x256xi32>
    %c0_i32_25 = arith.constant 0 : i32
    %68 = arith.cmpi slt, %61, %c0_i32_25 : i32
    %69 = vector.broadcast %68 : i1 to vector<32x256xi1>
    %70 = vector.broadcast %69 : vector<32x256xi1> to vector<32x256xi1>
    %71 = arith.xori %67, %70 : vector<32x256xi1>
    %72 = arith.andi %71, %65 : vector<32x256xi1>
    %73 = vector.broadcast %61 : i32 to vector<32x256xi32>
    %74 = arith.addi %63, %73 : vector<32x256xi32>
    %75 = arith.select %72, %74, %63 : vector<32x256xi1>, vector<32x256xi32>
    %c0_i32_26 = arith.constant 0 : i32
    %76 = vector.broadcast %c0_i32_26 : i32 to vector<32x256xi32>
    %77 = arith.cmpi ne, %75, %76 : vector<32x256xi32>
    %c15_i32_27 = arith.constant 15 : i32
    %78 = vector.broadcast %c15_i32_27 : i32 to vector<32x256xi32>
    %79 = arith.cmpi ne, %75, %78 : vector<32x256xi32>
    %80 = vector.extract_strided_slice %58 {offsets = [0, 0], sizes = [32, 256], strides = [1, 1]} : vector<32x290xf32> to vector<32x256xf32>
    %cst_28 = arith.constant 0.000000e+00 : f32
    %81 = vector.broadcast %cst_28 : f32 to vector<32x256xf32>
    %82 = arith.select %77, %80, %81 : vector<32x256xi1>, vector<32x256xf32>
    %83 = vector.extract_strided_slice %58 {offsets = [0, 1], sizes = [32, 256], strides = [1, 1]} : vector<32x290xf32> to vector<32x256xf32>
    %84 = vector.extract_strided_slice %58 {offsets = [0, 2], sizes = [32, 256], strides = [1, 1]} : vector<32x290xf32> to vector<32x256xf32>
    %cst_29 = arith.constant 0.000000e+00 : f32
    %85 = vector.broadcast %cst_29 : f32 to vector<32x256xf32>
    %86 = arith.select %79, %84, %85 : vector<32x256xi1>, vector<32x256xf32>
    %87 = vector.extract_strided_slice %58 {offsets = [0, 16], sizes = [32, 256], strides = [1, 1]} : vector<32x290xf32> to vector<32x256xf32>
    %cst_30 = arith.constant 0.000000e+00 : f32
    %88 = vector.broadcast %cst_30 : f32 to vector<32x256xf32>
    %89 = arith.select %77, %87, %88 : vector<32x256xi1>, vector<32x256xf32>
    %90 = vector.extract_strided_slice %58 {offsets = [0, 17], sizes = [32, 256], strides = [1, 1]} : vector<32x290xf32> to vector<32x256xf32>
    %91 = vector.extract_strided_slice %58 {offsets = [0, 18], sizes = [32, 256], strides = [1, 1]} : vector<32x290xf32> to vector<32x256xf32>
    %cst_31 = arith.constant 0.000000e+00 : f32
    %92 = vector.broadcast %cst_31 : f32 to vector<32x256xf32>
    %93 = arith.select %79, %91, %92 : vector<32x256xi1>, vector<32x256xf32>
    %94 = vector.extract_strided_slice %58 {offsets = [0, 32], sizes = [32, 256], strides = [1, 1]} : vector<32x290xf32> to vector<32x256xf32>
    %cst_32 = arith.constant 0.000000e+00 : f32
    %95 = vector.broadcast %cst_32 : f32 to vector<32x256xf32>
    %96 = arith.select %77, %94, %95 : vector<32x256xi1>, vector<32x256xf32>
    %97 = vector.extract_strided_slice %58 {offsets = [0, 33], sizes = [32, 256], strides = [1, 1]} : vector<32x290xf32> to vector<32x256xf32>
    %98 = vector.extract_strided_slice %58 {offsets = [0, 34], sizes = [32, 256], strides = [1, 1]} : vector<32x290xf32> to vector<32x256xf32>
    %cst_33 = arith.constant 0.000000e+00 : f32
    %99 = vector.broadcast %cst_33 : f32 to vector<32x256xf32>
    %100 = arith.select %79, %98, %99 : vector<32x256xi1>, vector<32x256xf32>
    %c0_34 = arith.constant 0 : index
    %c0_35 = arith.constant 0 : index
    %101 = vector.load %arg7[%c0_34, %c0_35] : memref<288x256xf32, #tpu.memory_space<vmem>>, vector<32x256xf32>
    tpu.vector_store %arg7[%c0_34, %c0_35], %82 {strides = array<i32>} : memref<288x256xf32, #tpu.memory_space<vmem>>, vector<32x256xf32>,
    %c32 = arith.constant 32 : index
    %c0_36 = arith.constant 0 : index
    %102 = vector.load %arg7[%c32, %c0_36] : memref<288x256xf32, #tpu.memory_space<vmem>>, vector<32x256xf32>
    tpu.vector_store %arg7[%c32, %c0_36], %83 {strides = array<i32>} : memref<288x256xf32, #tpu.memory_space<vmem>>, vector<32x256xf32>,
    %c64 = arith.constant 64 : index
    %c0_37 = arith.constant 0 : index
    %103 = vector.load %arg7[%c64, %c0_37] : memref<288x256xf32, #tpu.memory_space<vmem>>, vector<32x256xf32>
    tpu.vector_store %arg7[%c64, %c0_37], %86 {strides = array<i32>} : memref<288x256xf32, #tpu.memory_space<vmem>>, vector<32x256xf32>,
    %c96 = arith.constant 96 : index
    %c0_38 = arith.constant 0 : index
    %104 = vector.load %arg7[%c96, %c0_38] : memref<288x256xf32, #tpu.memory_space<vmem>>, vector<32x256xf32>
    tpu.vector_store %arg7[%c96, %c0_38], %89 {strides = array<i32>} : memref<288x256xf32, #tpu.memory_space<vmem>>, vector<32x256xf32>,
    %c128 = arith.constant 128 : index
    %c0_39 = arith.constant 0 : index
    %105 = vector.load %arg7[%c128, %c0_39] : memref<288x256xf32, #tpu.memory_space<vmem>>, vector<32x256xf32>
    tpu.vector_store %arg7[%c128, %c0_39], %90 {strides = array<i32>} : memref<288x256xf32, #tpu.memory_space<vmem>>, vector<32x256xf32>,
    %c160 = arith.constant 160 : index
    %c0_40 = arith.constant 0 : index
    %106 = vector.load %arg7[%c160, %c0_40] : memref<288x256xf32, #tpu.memory_space<vmem>>, vector<32x256xf32>
    tpu.vector_store %arg7[%c160, %c0_40], %93 {strides = array<i32>} : memref<288x256xf32, #tpu.memory_space<vmem>>, vector<32x256xf32>,
    %c192 = arith.constant 192 : index
    %c0_41 = arith.constant 0 : index
    %107 = vector.load %arg7[%c192, %c0_41] : memref<288x256xf32, #tpu.memory_space<vmem>>, vector<32x256xf32>
    tpu.vector_store %arg7[%c192, %c0_41], %96 {strides = array<i32>} : memref<288x256xf32, #tpu.memory_space<vmem>>, vector<32x256xf32>,
    %c224 = arith.constant 224 : index
    %c0_42 = arith.constant 0 : index
    %108 = vector.load %arg7[%c224, %c0_42] : memref<288x256xf32, #tpu.memory_space<vmem>>, vector<32x256xf32>
    tpu.vector_store %arg7[%c224, %c0_42], %97 {strides = array<i32>} : memref<288x256xf32, #tpu.memory_space<vmem>>, vector<32x256xf32>,
    %c256 = arith.constant 256 : index
    %c0_43 = arith.constant 0 : index
    %109 = vector.load %arg7[%c256, %c0_43] : memref<288x256xf32, #tpu.memory_space<vmem>>, vector<32x256xf32>
    tpu.vector_store %arg7[%c256, %c0_43], %100 {strides = array<i32>} : memref<288x256xf32, #tpu.memory_space<vmem>>, vector<32x256xf32>,
    %c0_44 = arith.constant 0 : index
    %c0_45 = arith.constant 0 : index
    %110 = vector.load %arg4[%c0_44, %c0_45] : memref<3x288xf32, #tpu.memory_space<vmem>>, vector<3x288xf32>
    %c0_46 = arith.constant 0 : index
    %c0_47 = arith.constant 0 : index
    %111 = vector.load %arg7[%c0_46, %c0_47] : memref<288x256xf32, #tpu.memory_space<vmem>>, vector<288x256xf32>
    %cst_48 = arith.constant dense<0.000000e+00> : vector<3x256xf32>
    %112 = tpu.matmul %110, %111, %cst_48 {dimension_numbers = #tpu.dot_dimension_numbers<[1], [0], [0], [1], [0, 0, 1, 1], [], []>} : vector<3x288xf32>, vector<288x256xf32>, vector<3x256xf32> -> vector<3x256xf32>
    %c0_49 = arith.constant 0 : index
    %c0_50 = arith.constant 0 : index
    %113 = vector.load %arg5[%c0_49, %c0_50] : memref<3x1xf32, #tpu.memory_space<vmem>>, vector<3x1xf32>
    %114 = vector.broadcast %113 : vector<3x1xf32> to vector<3x256xf32>
    %115 = arith.addf %112, %114 : vector<3x256xf32>
    %116 = math.tanh %115 : vector<3x256xf32>
    %117 = arith.addf %1, %116 : vector<3x256xf32>
    %c0_51 = arith.constant 0 : index
    %c0_52 = arith.constant 0 : index
    %c0_53 = arith.constant 0 : index
    %118 = vector.load %arg6[%c0_51, %c0_52, %c0_53] : memref<1x3x256xf32, #tpu.memory_space<vmem>>, vector<1x3x256xf32>
    %119 = vector.shape_cast %118 : vector<1x3x256xf32> to vector<3x256xf32>
    %120 = vector.shape_cast %117 : vector<3x256xf32> to vector<1x3x256xf32>
    tpu.vector_store %arg6[%c0_51, %c0_52, %c0_53], %120 {strides = array<i32>} : memref<1x3x256xf32, #tpu.memory_space<vmem>>, vector<1x3x256xf32>,
    return
  }
  func.func @transform_0(%arg0: i32) -> (i32, i32, i32) {
    %c0_i32 = arith.constant 0 : i32
    %c0_i32_0 = arith.constant 0 : i32
    %c0_i32_1 = arith.constant 0 : i32
    return %arg0, %c0_i32, %c0_i32_0 : i32, i32, i32
  }
  func.func @transform_1(%arg0: i32) -> (i32, i32) {
    %c0_i32 = arith.constant 0 : i32
    %c0_i32_0 = arith.constant 0 : i32
    %c0_i32_1 = arith.constant 0 : i32
    return %c0_i32, %c0_i32_0 : i32, i32
  }
  func.func @transform_2(%arg0: i32) -> (i32, i32) {
    %c0_i32 = arith.constant 0 : i32
    %c0_i32_0 = arith.constant 0 : i32
    %c0_i32_1 = arith.constant 0 : i32
    return %c0_i32, %c0_i32_0 : i32, i32
  }
  func.func @transform_3(%arg0: i32) -> (i32, i32) {
    %c0_i32 = arith.constant 0 : i32
    %c0_i32_0 = arith.constant 0 : i32
    %c0_i32_1 = arith.constant 0 : i32
    return %c0_i32, %c0_i32_0 : i32, i32
  }
  func.func @transform_4(%arg0: i32) -> (i32, i32) {
    %c0_i32 = arith.constant 0 : i32
    %c0_i32_0 = arith.constant 0 : i32
    %c0_i32_1 = arith.constant 0 : i32
    return %c0_i32, %c0_i32_0 : i32, i32
  }
  func.func @transform_5(%arg0: i32) -> (i32, i32, i32) {
    %c0_i32 = arith.constant 0 : i32
    %c0_i32_0 = arith.constant 0 : i32
    %c0_i32_1 = arith.constant 0 : i32
    return %arg0, %c0_i32, %c0_i32_0 : i32, i32, i32
  }
}

</mosaic_0001>

<bundles_post_ra>
// kernel: tpu_custom_call.1
= control target key start
LH: loop header
LB: loop body
LE: loop exit
PB: predicated region body
PF: predicated region fallthrough
CT: control target
= control target key end

     0   :  { %s1601_s18 = smov 0   ;;  %s2383_s0 = inlined_call_operand.vmem [shape: f32[2,3,256], index: 0, kind: input, shape index: {}]   ;;  %s2384_s1 = inlined_call_operand.vmem [shape: f32[32,27], index: 1, kind: input, shape index: {}]   ;;  %s2385_s2 = inlined_call_operand.vmem [shape: f32[32,1], index: 2, kind: input, shape index: {}]   ;;  %s2386_s3 = inlined_call_operand.vmem [shape: f32[3,288], index: 3, kind: input, shape index: {}]   ;;  %s2387_s4 = inlined_call_operand.vmem [shape: f32[3,1], index: 4, kind: input, shape index: {}]   ;;  %s2388_s5 = inlined_call_operand.vmem [shape: f32[2,3,256], index: 5, kind: output, shape index: {}]  }
   0x1 LB: > { %s1330_s19 = sadd.s32 4294967295, %s1559_s18   ;;  %p1334_p0 = scmp.ge.s32.totalorder %s1559_s18, 1  ;;  %s1559_s18 = sphi %s1601_s18, %s15_s18  }
   0x2   : > { %p187_p1 = scmp.lt.s32.totalorder %s1559_s18, 3 }
   0x4   : > { %p188_p2 = pnand %p1334_p0, %p187_p1 }
   0x6   : > { %191 = sbr.rel (%p188_p2) target bundleno = 1019 (0x3fb), region = 40 }
   0xb   : > { %p215_p3 = scmp.lt.s32.totalorder %s1330_s19, 1  ;;  %v1053_v1 = vld [vmem:[%s2386_s3] sm:$0x77]  ;;  %s1561_s26 = smov 17   ;;  %vm2389_vm0 = vcmask 138240   ;;  %v241_v26 = vlaneseq  ;;  %vm295_vm1 = vcmask 916480  }
   0xc   : > { %s1562_s27 = smov 94   ;;  %s1563_s28 = smov 126   ;;  %vm282_vm2 = vcmask 1031168   ;;  %vm2394_vm3 = vcmask 900096   ;;  %vm321_vm5 = vcmask 785408   ;;  %v432_v50 = vld [vmem:[%s2385_s2] sm:$0xff] }
   0xd   : > { %s2496_s19 = smov (!%p215_p3, %s1330_s19), 1  ;;  %s1564_s29 = smov 110   ;;  %v242_v30 = vand.u32 127, %v241_v26  ;;  %vm2392_vm8 = vcmask 777216   ;;  %vm413_vm9 = vcmask 1040384   ;;  %v1570_v54 = vmov 0  }
   0xe   : > { %s1353_s20 = sshll.u32 %s2496_s19, 3  ;;  %s1565_s30 = smov 112   ;;  %1456 = vset.pattern.permute.xlu1 %v1570_v54  ;;  %1458 = vset.pattern.permute.xlu0 %v1570_v54  ;;  %vm350_vm10 = vcmask 1039360   ;;  %vm376_vm11 = vcmask 908288   ;;  %vm2390_vm12 = vcmask 769024   ;;  %vm2391_vm13 = vcmask 1041408  }
   0xf   : > { %s219_s23 = scalar_lea.vmem %s2383_s0, %s1353_s20  ;;  %s1566_s6 = smov 96   ;;  %v1675_v33 = vadd.s32 128, %v242_v30  ;;  %v248_v38 = vand.u32 15, %v242_v30  ;;  %1457 = vset.pattern.permute.xlu2 %v1570_v54  ;;  %vm407_vm14 = vcmask 1042432   ;;  %vm425_vm15 = vcmask 1044480   ;;  %v428_v26 = vld [vmem:[%s2384_s1] sm:$0xff] }
  0x10   : > { %v1617_v0 = vld [vmem:[%s219_s23] sm:$0x77]  ;;  %s1567_s7 = smov 111   ;;  %s1568_s8 = smov 127  }
  0x11   : > { %2414 = vst [vmem:[#allocation3_spill] sm:$0xff] %v1617_v0  ;;  %s1569_s9 = smov 95   ;;  %vm1681_vm4 = vcmp.ne.s32.totalorder %v248_v38, 15  ;;  %v255_v42 = vand.u32 15, %v1675_v33  ;;  %vm1699_vm6 = vcmp.ne.s32.totalorder %v248_v38, 0  ;;  %v429_v38 = vld [vmem:[%s2384_s1 + $0x8] sm:$0xff] }
  0x12   : > { %227 = vst [vmem:[#allocation1] ss:$2 sm:$0xff] %v1617_v0 }
  0x13   : > { %vm1705_vm7 = vcmp.ne.s32.totalorder %v255_v42, 15 }
  0x19   : > { %v228_v2 = vld.sshfl [vmem:[#allocation1] sm:$0xff pattern:$0x75316420]  ;;  %v229_v3 = vld.sshfl [vmem:[#allocation1 + $0x8] sm:$0xff pattern:$0x75316420] }
  0x1a   : > { %230 = vrot.lane.b32.xlu0 %v228_v2, %s1561_s26  ;;  %1135 = vst [vmem:[#allocation1] ss:$2 sm:$0xff] %v1053_v1 }
  0x22   : > { %232 = vrot.lane.b32.xlu0 %v229_v3, %s1561_s26 }
  0x8c   : > { %v231_v4 = vpop.permute.xlu0 %230 }
  0x8d   : > { %v1626_v5 = vsel %vm2389_vm0, 0.0, %v231_v4 }
  0x8e   : > { %328 = vrot.lane.b32.xlu0 %v1626_v5, %s1562_s27  ;;  %v367_v11 = vrot.slane %v1626_v5, 4  ;;  %v393_v15 = vrot.slane %v1626_v5, 3  ;;  %v341_v18 = vrot.slane %v1626_v5, 5 }
  0x94   : > { %v233_v6 = vpop.permute.xlu0 %232 }
  0x95   : > { %v1631_v7 = vsel %vm2389_vm0, %v231_v4, %v233_v6  ;;  %v240_v8 = vsel %vm2389_vm0, %v233_v6, 0.0  ;;  %vm416_vm0 = vcmask 1043456  }
  0x96   : > { %280 = vrot.lane.b32.xlu0 %v240_v8, %s1563_s28  ;;  %v1431_v9 = vpack.i.bf16 %v1631_v7, %v1626_v5  ;;  %v368_v10 = vrot.slane %v1631_v7, 4  ;;  %v394_v13 = vrot.slane %v1631_v7, 3  ;;  %v343_v14 = vrot.slane %v240_v8, 5 }
  0x97   : > { %v342_v17 = vrot.slane %v1631_v7, 5  ;;  %v395_v20 = vrot.slane %v240_v8, 3  ;;  %v369_v21 = vrot.slane %v240_v8, 4 }
  0x98   : > { %1432 = vrot.lane.b32.xlu2 %v1431_v9, %s1563_s28  ;;  %1422 = vrot.lane.b32.xlu1 %v1431_v9, %s1564_s29  ;;  %v1446_v12 = vpack.i.bf16 %v368_v10, %v367_v11  ;;  %v1441_v16 = vpack.i.bf16 %v394_v13, %v393_v15 }
  0x99   : > { %v1451_v19 = vpack.i.bf16 %v342_v17, %v341_v18 }
  0x9e   : > { %332 = vrot.lane.b32.xlu0 %v240_v8, %s1562_s27 }
  0xa0   : > { %1437 = vrot.lane.b32.xlu2 %v1431_v9, %s1565_s30  ;;  %1427 = vrot.lane.b32.xlu1 %v1431_v9, %s1566_s6 }
  0xa6   : > { %1447 = vrot.lane.b32.xlu0 %v1446_v12, %s1567_s7 }
  0xa8   : > { %319 = vrot.lane.b32.xlu2 %v240_v8, %s1566_s6  ;;  %330 = vrot.lane.b32.xlu1 %v1631_v7, %s1562_s27 }
  0xae   : > { %348 = vrot.lane.b32.xlu0 %v343_v14, %s1568_s8 }
  0xb0   : > { %306 = vrot.lane.b32.xlu1 %v240_v8, %s1564_s29  ;;  %1442 = vrot.lane.b32.xlu2 %v1441_v16, %s1569_s9 }
  0xb8   : > { %293 = vrot.lane.b32.xlu1 %v240_v8, %s1565_s30  ;;  %1452 = vrot.lane.b32.xlu2 %v1451_v19, %s1568_s8 }
  0xc0   : > { %400 = vrot.lane.b32.xlu1 %v395_v20, %s1569_s9  ;;  %374 = vrot.lane.b32.xlu2 %v369_v21, %s1567_s7  ;;  %v272_v20 = vsel %vm1699_vm6, %v1626_v5, 0.0 }
  0xc8   : > { %438 = vperm.xlu1 %1456, %v432_v50  }
  0xf2   : > { %v1659_v22 = vpop.permute.xlu2 %1432 }
  0xf3   : > { %v1435_v34 = vunpack.i.h.bf16 %v1659_v22  ;;  %v1434_v35 = vunpack.i.l.bf16 %v1659_v22 }
  0xf5   : > { %v283_v44 = vsel %vm282_vm2, %v1434_v35, %v1435_v34  ;;  %v435_v35 = vld [vmem:[%s2385_s2 + $0x18] sm:$0xff] }
  0xf6   : > { %v287_v55 = vsel %vm1681_vm4, %v283_v44, 0.0  ;;  %453 = vperm.xlu1 %1456, %v435_v35  }
  0xf7   : > { %v357_v6 = vrot.slane %v287_v55, 2 }
  0xfa   : > { %v1661_v23 = vpop.permute.xlu2 %1437 }
  0xfb   : > { %v1440_v31 = vunpack.i.h.bf16 %v1661_v23  ;;  %v1439_v32 = vunpack.i.l.bf16 %v1661_v23 }
  0xfd   : > { %v296_v41 = vsel %vm295_vm1, %v1439_v32, %v1440_v31 }
  0xfe   : > { %v300_v51 = vsel %vm1699_vm6, %v296_v41, 0.0 }
  0xff   : > { %v363_v59 = vrot.slane %v300_v51, 7 }
 0x100   : > { %v1663_v24 = vpop.permute.xlu0 %328 }
 0x101   : > { %v414_v15 = vsel %vm413_vm9, %v357_v6, %v363_v59 }
 0x102   : > { %v1665_v25 = vpop.permute.xlu2 %319 }
 0x108   : > { %v1667_v27 = vpop.permute.xlu0 %280 }
 0x109   : > { %v284_v5 = vsel %vm282_vm2, %v1435_v34, %v1667_v27 }
 0x10a   : > { %v1669_v28 = vpop.permute.xlu1 %1422  ;;  %v1671_v29 = vpop.permute.xlu2 %1442  ;;  %v288_v22 = vsel %vm1705_vm7, %v284_v5, 0.0 }
 0x10b   : > { %v1425_v36 = vunpack.i.h.bf16 %v1669_v28  ;;  %v1424_v37 = vunpack.i.l.bf16 %v1669_v28  ;;  %v1445_v60 = vunpack.i.h.bf16 %v1671_v29  ;;  %v1444_v1 = vunpack.i.l.bf16 %v1671_v29 }
 0x10d   : > { %v309_v45 = vsel %vm2394_vm3, %v1424_v37, %v1425_v36  ;;  %v403_v17 = vsel %vm2392_vm8, %v1444_v1, %v1445_v60  ;;  %vm456_vm8 = vcmask 220160  }
 0x10e   : > { %v313_v56 = vsel %vm1681_vm4, %v309_v45, 0.0 }
 0x10f   : > { %v383_v4 = vrot.slane %v313_v56, 1 }
 0x110   : > { %v333_v39 = vpop.permute.xlu0 %332 }
 0x112   : > { %v1689_v43 = vpop.permute.xlu1 %1427  ;;  %v1717_v53 = vpop.permute.xlu2 %1452 }
 0x113   : > { %v1430_v46 = vunpack.i.h.bf16 %v1689_v43  ;;  %v1429_v47 = vunpack.i.l.bf16 %v1689_v43  ;;  %v1455_v61 = vunpack.i.h.bf16 %v1717_v53  ;;  %v1454_v62 = vunpack.i.l.bf16 %v1717_v53  ;;  %v433_v53 = vld [vmem:[%s2385_s2 + $0x8] sm:$0xff] }
 0x114   : > { %443 = vperm.xlu2 %1457, %v433_v53  }
 0x115   : > { %v322_v52 = vsel %vm321_vm5, %v1429_v47, %v1430_v46  ;;  %v351_v16 = vsel %vm350_vm10, %v1454_v62, %v1455_v61  ;;  %v323_v27 = vsel %vm321_vm5, %v1430_v46, %v1665_v25 }
 0x116   : > { %v326_v57 = vsel %vm1699_vm6, %v322_v52, 0.0  ;;  %v408_v21 = vsel %vm407_vm14, %v272_v20, %v351_v16  ;;  %v434_v52 = vld [vmem:[%s2385_s2 + $0x10] sm:$0xff] }
 0x117   : > { %v389_v58 = vrot.slane %v326_v57, 6  ;;  %448 = vperm.xlu0 %1458, %v434_v52  }
 0x118   : > { %v1448_v63 = vpop.permute.xlu0 %1447 }
 0x119   : > { %v1450_v2 = vunpack.i.h.bf16 %v1448_v63  ;;  %v1449_v3 = vunpack.i.l.bf16 %v1448_v63  ;;  %v423_v11 = vsel %vm2391_vm13, %v383_v4, %v389_v58  ;;  %vm2393_vm13 = vcmask 1045504  }
 0x11a   : > { %v331_v8 = vpop.permute.xlu1 %330  ;;  %v426_v19 = vsel %vm425_vm15, %v423_v11, %v403_v17  ;;  %v411_v32 = vsel %vm2393_vm13, %v408_v21, %v357_v6  ;;  %vm1772_vm13 = vcmp.ne.s32.totalorder %v255_v42, 0  ;;  %v358_v42 = vrot.slane %v288_v22, 2  ;;  %v375_v43 = vpop.permute.xlu2 %374 }
 0x11b   : > { %v335_v9 = vsel %vm2390_vm12, %v1663_v24, %v331_v8  ;;  %v336_v10 = vsel %vm2390_vm12, %v331_v8, %v333_v39  ;;  %v377_v12 = vsel %vm376_vm11, %v1449_v3, %v1450_v2  ;;  %vm419_vm12 = vcmask 1046528  }
 0x11c   : > { %v339_v13 = vsel %vm1681_vm4, %v335_v9, 0.0  ;;  %v340_v14 = vsel %vm1705_vm7, %v336_v10, 0.0  ;;  %v417_v18 = vsel %vm416_vm0, %v414_v15, %v377_v12  ;;  %v327_v44 = vsel %vm1772_vm13, %v323_v27, 0.0 }
 0x11d   : > { %1339 = vmatpush.msk.msra.mxu2 %vm407_vm14, %v339_v13  ;;  %1344 = vmatpush.msk.msra.mxu1 %vm407_vm14, %v340_v14  ;;  %v420_v24 = vsel %vm419_vm12, %v417_v18, %v383_v4  ;;  %v390_v46 = vrot.slane %v327_v44, 6  ;;  %v378_v47 = vsel %vm376_vm11, %v1450_v2, %v375_v43  ;;  %v273_v58 = vsel %vm1772_vm13, %v1631_v7, 0.0 }
 0x11f   : > { %488 = vmatpush.msra.mxu2 %v426_v19 }
 0x120   : > { %v349_v45 = vpop.permute.xlu0 %348 }
 0x121   : > { %489 = vmatpush.msra.mxu2 %v420_v24  ;;  %v352_v50 = vsel %vm350_vm10, %v1455_v61, %v349_v45  ;;  %v431_v61 = vld [vmem:[%s2384_s1 + $0x18] sm:$0xff] }
 0x122   : > { %v307_v30 = vpop.permute.xlu1 %306  ;;  %v409_v59 = vsel %vm407_vm14, %v273_v58, %v352_v50 }
 0x123   : > { %490 = vmatpush.msra.mxu2 %v411_v32  ;;  %v310_v37 = vsel %vm2394_vm3, %v1425_v36, %v307_v30  ;;  %vm2424_vm3 = vcmask 1041408  }
 0x124   : > { %1340 = vmatmul.msk.f32.vlgmr.msra.gmra.mxu2 %vm456_vm8, %v428_v26  ;;  %v314_v34 = vsel %vm1705_vm7, %v310_v37, 0.0 }
 0x125   : > { %v384_v25 = vrot.slane %v314_v34, 1 }
 0x127   : > { %v424_v55 = vsel %vm2424_vm3, %v384_v25, %v390_v46 }
 0x12a   : > { %v294_v39 = vpop.permute.xlu1 %293 }
 0x12b   : > { %v297_v28 = vsel %vm295_vm1, %v1440_v31, %v294_v39  ;;  %v430_v31 = vld [vmem:[%s2384_s1 + $0x10] sm:$0xff] }
 0x12c   : > { %v301_v33 = vsel %vm1772_vm13, %v297_v28, 0.0  ;;  %1341 = vmatmul.msk.f32.gmra.mxu2 %vm456_vm8, %v429_v38 }
 0x12d   : > { %v364_v36 = vrot.slane %v301_v33, 7 }
 0x12f   : > { %v415_v23 = vsel %vm413_vm9, %v358_v42, %v364_v36  ;;  %vm2423_vm9 = vcmask 777216  }
 0x130   : > { %v418_v56 = vsel %vm416_vm0, %v415_v23, %v378_v47 }
 0x131   : > { %v421_v29 = vsel %vm419_vm12, %v418_v56, %v384_v25 }
 0x132   : > { %v401_v51 = vpop.permute.xlu1 %400 }
 0x133   : > { %v404_v54 = vsel %vm2423_vm9, %v1445_v60, %v401_v51  ;;  %vm2425_vm9 = vcmask 1045504  }
 0x134   : > { %1342 = vmatmul.msk.f32.gmra.mxu2 %vm456_vm8, %v430_v31  ;;  %v427_v57 = vsel %vm425_vm15, %v424_v55, %v404_v54  ;;  %v412_v60 = vsel %vm2425_vm9, %v409_v59, %v358_v42 }
 0x135   : > { %517 = vmatpush.msra.mxu1 %v427_v57 }
 0x137   : > { %518 = vmatpush.msra.mxu1 %v421_v29 }
 0x139   : > { %519 = vmatpush.msra.mxu1 %v412_v60 }
 0x13a   : > { %1345 = vmatmul.msk.f32.vlgmr.msra.gmra.mxu1 %vm456_vm8, %v428_v26  ;;  %v439_v7 = vpop.permute.xlu1 %438 }
 0x13c   : > { %1343 = vmatmul.msk.f32.gmra.mxu2 %vm456_vm8, %v431_v61 }
 0x142   : > { %1346 = vmatmul.msk.f32.gmra.mxu1 %vm456_vm8, %v429_v38 }
 0x14a   : > { %1347 = vmatmul.msk.f32.gmra.mxu1 %vm456_vm8, %v430_v31 }
 0x152   : > { %1348 = vmatmul.msk.f32.gmra.mxu1 %vm456_vm8, %v431_v61 }
 0x168   : > { %v454_v26 = vpop.permute.xlu1 %453 }
 0x16e   : > { %v444_v4 = vpop.permute.xlu2 %443 }
 0x189   : > { %v449_v9 = vpop.permute.xlu0 %448 }
 0x1a7   : > { %v492_v62 = vpop.f32.mrf.mxu2 }
 0x1a8   : > { %v493_v63 = vadd.f32 %v492_v62, %v439_v7 }
 0x1aa   : > { %v541_v1 = vmul.f32 0.1, %v493_v63  ;;  %vm533_vm3 = vcmp.gt.f32.partialorder %v493_v63, 0.0 }
 0x1ac   : > { %v549_v2 = vsel %vm533_vm3, %v493_v63, %v541_v1 }
 0x1ad   : > { %565 = vrot.lane.b32.xlu2 %v549_v2, %s1561_s26 }
 0x1af   : > { %v495_v3 = vpop.f32.mrf.mxu2 }
 0x1b0   : > { %v496_v6 = vadd.f32 %v495_v3, %v444_v4 }
 0x1b2   : > { %v543_v8 = vmul.f32 0.1, %v496_v6  ;;  %vm535_vm12 = vcmp.gt.f32.partialorder %v496_v6, 0.0 }
 0x1b4   : > { %v551_v10 = vsel %vm535_vm12, %v496_v6, %v543_v8 }
 0x1b5   : > { %569 = vrot.lane.b32.xlu2 %v551_v10, %s1561_s26 }
 0x1b7   : > { %v498_v11 = vpop.f32.mrf.mxu2  ;;  %v521_v12 = vpop.f32.mrf.mxu1 }
 0x1b8   : > { %v522_v13 = vadd.f32 %v521_v12, %v439_v7  ;;  %v499_v15 = vadd.f32 %v498_v11, %v449_v9 }
 0x1ba   : > { %v542_v14 = vmul.f32 0.1, %v522_v13  ;;  %vm534_vm8 = vcmp.gt.f32.partialorder %v522_v13, 0.0  ;;  %v545_v17 = vmul.f32 0.1, %v499_v15  ;;  %vm537_vm14 = vcmp.gt.f32.partialorder %v499_v15, 0.0 }
 0x1bc   : > { %v550_v16 = vsel %vm534_vm8, %v522_v13, %v542_v14  ;;  %v553_v24 = vsel %vm537_vm14, %v499_v15, %v545_v17  ;;  %vm2426_vm8 = vcmask 138240  }
 0x1bd   : > { %567 = vrot.lane.b32.xlu1 %v550_v16, %s1561_s26  ;;  %vm2428_vm14 = vmmov %vm2426_vm8 }
 0x1bf   : > { %v524_v18 = vpop.f32.mrf.mxu1  ;;  %v501_v20 = vpop.f32.mrf.mxu2 }
 0x1c0   : > { %v525_v19 = vadd.f32 %v524_v18, %v444_v4  ;;  %v502_v30 = vadd.f32 %v501_v20, %v454_v26 }
 0x1c2   : > { %v544_v21 = vmul.f32 0.1, %v525_v19  ;;  %vm536_vm15 = vcmp.gt.f32.partialorder %v525_v19, 0.0  ;;  %v547_v5 = vmul.f32 0.1, %v502_v30  ;;  %vm539_vm9 = vcmp.gt.f32.partialorder %v502_v30, 0.0 }
 0x1c4   : > { %v552_v32 = vsel %vm536_vm15, %v525_v19, %v544_v21  ;;  %v555_v39 = vsel %vm539_vm9, %v502_v30, %v547_v5  ;;  %vm2430_vm15 = vmmov %vm2426_vm8 }
 0x1c5   : > { %571 = vrot.lane.b32.xlu0 %v552_v32, %s1561_s26  ;;  %573 = vrot.lane.b32.xlu1 %v553_v24, %s1561_s26  ;;  %vm2431_vm9 = vmmov %vm2426_vm8 }
 0x1c7   : > { %v527_v35 = vpop.f32.mrf.mxu1 }
 0x1c8   : > { %v528_v37 = vadd.f32 %v527_v35, %v449_v9 }
 0x1ca   : > { %v546_v38 = vmul.f32 0.1, %v528_v37  ;;  %vm538_vm3 = vcmp.gt.f32.partialorder %v528_v37, 0.0 }
 0x1cc   : > { %v554_v22 = vsel %vm538_vm3, %v528_v37, %v546_v38  ;;  %vm2432_vm3 = vmmov %vm2426_vm8 }
 0x1cd   : > { %577 = vrot.lane.b32.xlu0 %v555_v39, %s1561_s26  ;;  %575 = vrot.lane.b32.xlu2 %v554_v22, %s1561_s26 }
 0x1cf   : > { %v530_v27 = vpop.f32.mrf.mxu1 }
 0x1d0   : > { %v531_v28 = vadd.f32 %v530_v27, %v454_v26 }
 0x1d2   : > { %v548_v34 = vmul.f32 0.1, %v531_v28  ;;  %vm540_vm12 = vcmp.gt.f32.partialorder %v531_v28, 0.0 }
 0x1d4   : > { %v556_v33 = vsel %vm540_vm12, %v531_v28, %v548_v34  ;;  %vm2434_vm12 = vmmov %vm2432_vm3 }
 0x1d5   : > { %579 = vrot.lane.b32.xlu1 %v556_v33, %s1561_s26 }
 0x207   : > { %v566_v36 = vpop.permute.xlu2 %565 }
 0x208   : > { %v1834_v42 = vsel %vm2426_vm8, 0.0, %v566_v36  ;;  %vm2436_vm8 = vmmov %vm2432_vm3 }
 0x209   : > { %2427 = vst [vmem:[#allocation4_spill] sm:$0xff] %v1834_v42  ;;  %621 = vrot.lane.b32.xlu2 %v1834_v42, %s1563_s28 }
 0x20f   : > { %v570_v47 = vpop.permute.xlu2 %569 }
 0x210   : > { %v1880_v50 = vsel %vm2432_vm3, 0.0, %v570_v47 }
 0x211   : > { %669 = vrot.lane.b32.xlu2 %v1834_v42, %s1565_s30  ;;  %2433 = vst [vmem:[#allocation6_spill] sm:$0xff] %v1880_v50 }
 0x219   : > { %765 = vrot.lane.b32.xlu2 %v1834_v42, %s1566_s6 }
 0x221   : > { %717 = vrot.lane.b32.xlu2 %v1834_v42, %s1564_s29 }
 0x227   : > { %v576_v53 = vpop.permute.xlu2 %575 }
 0x228   : > { %v1910_v54 = vsel %vm2436_vm8, %v576_v53, 0.0  ;;  %vm2446_vm8 = vcmask 777216  }
 0x22f   : > { %v568_v44 = vpop.permute.xlu1 %567 }
 0x230   : > { %v1845_v43 = vsel %vm2428_vm14, %v566_v36, %v568_v44  ;;  %v1848_v45 = vsel %vm2430_vm15, %v568_v44, 0.0  ;;  %vm2437_vm14 = vmmov %vm2432_vm3 }
 0x231   : > { %2429 = vst [vmem:[#allocation5_spill] sm:$0xff] %v1845_v43  ;;  %721 = vrot.lane.b32.xlu0 %v1848_v45, %s1564_s29  ;;  %625 = vrot.lane.b32.xlu1 %v1848_v45, %s1563_s28  ;;  %v1469_v25 = vpack.i.bf16 %v1845_v43, %v1834_v42  ;;  %vm2439_vm15 = vmmov %vm2432_vm3 }
 0x233   : > { %1470 = vrot.lane.b32.xlu2 %v1469_v25, %s1567_s7 }
 0x237   : > { %v572_v23 = vpop.permute.xlu0 %571  ;;  %v574_v56 = vpop.permute.xlu1 %573 }
 0x238   : > { %v1858_v31 = vsel %vm2431_vm9, %v572_v23, 0.0  ;;  %v1896_v51 = vsel %vm2434_vm12, %v570_v47, %v572_v23  ;;  %v1920_v57 = vsel %vm2437_vm14, 0.0, %v574_v56  ;;  %v1933_v59 = vsel %vm2439_vm15, %v574_v56, %v576_v53  ;;  %vm2442_vm9 = vmmov %vm2432_vm3 }
 0x239   : > { %673 = vrot.lane.b32.xlu1 %v1848_v45, %s1565_s30  ;;  %623 = vrot.lane.b32.xlu0 %v1845_v43, %s1563_s28  ;;  %v1866_v46 = vpack.i.bf16 %v1848_v45, %v1858_v31  ;;  %2435 = vst [vmem:[#allocation7_spill] sm:$0xff] %v1896_v51  ;;  %v1489_v52 = vpack.i.bf16 %v1896_v51, %v1880_v50  ;;  %vm2444_vm12 = vmmov %vm2432_vm3  ;;  %vm2447_vm14 = vcmask 900096  }
 0x23a   : > { %2438 = vst [vmem:[#allocation8_spill] sm:$0xff] %v1920_v57  ;;  %v1499_v60 = vpack.i.bf16 %v1933_v59, %v1920_v57  ;;  %v1494_v7 = vpack.i.bf16 %v1910_v54, %v1896_v51  ;;  %vm2448_vm15 = vmmov %vm2447_vm14 }
 0x23b   : > { %1475 = vrot.lane.b32.xlu2 %v1866_v46, %s1569_s9  ;;  %2440 = vst [vmem:[#allocation9_spill] sm:$0xff] %v1933_v59 }
 0x23f   : > { %v578_v3 = vpop.permute.xlu0 %577 }
 0x240   : > { %v1976_v10 = vsel %vm2432_vm3, 0.0, %v578_v3  ;;  %vm2454_vm3 = vmmov %vm2447_vm14 }
 0x241   : > { %769 = vrot.lane.b32.xlu1 %v1848_v45, %s1566_s6  ;;  %671 = vrot.lane.b32.xlu0 %v1845_v43, %s1565_s30  ;;  %2443 = vst [vmem:[#allocation11_spill] sm:$0xff] %v1976_v10 }
 0x243   : > { %727 = vrot.lane.b32.xlu2 %v1858_v31, %s1564_s29 }
 0x247   : > { %v580_v63 = vpop.permute.xlu1 %579 }
 0x248   : > { %v604_v1 = vsel %vm2442_vm9, %v580_v63, 0.0  ;;  %v1998_v19 = vsel %vm2444_vm12, %v578_v3, %v580_v63  ;;  %vm2453_vm9 = vmmov %vm2446_vm8 }
 0x249   : > { %1460 = vrot.lane.b32.xlu1 %v1469_v25, %s1569_s9  ;;  %767 = vrot.lane.b32.xlu0 %v1845_v43, %s1566_s6  ;;  %v1514_v2 = vpack.i.bf16 %v1910_v54, %v604_v1  ;;  %v1519_v18 = vpack.i.bf16 %v1880_v50, %v604_v1  ;;  %2445 = vst [vmem:[#allocation12_spill] sm:$0xff] %v1998_v19  ;;  %vm2457_vm12 = vmmov %vm2446_vm8 }
 0x24a   : > { %v1529_v5 = vpack.i.bf16 %v1998_v19, %v1976_v10 }
 0x24b   : > { %627 = vrot.lane.b32.xlu2 %v1880_v50, %s1563_s28 }
 0x251   : > { %631 = vrot.lane.b32.xlu1 %v1858_v31, %s1563_s28  ;;  %719 = vrot.lane.b32.xlu0 %v1845_v43, %s1564_s29 }
 0x253   : > { %675 = vrot.lane.b32.xlu2 %v1880_v50, %s1565_s30 }
 0x259   : > { %679 = vrot.lane.b32.xlu1 %v1858_v31, %s1565_s30  ;;  %1465 = vrot.lane.b32.xlu0 %v1469_v25, %s1568_s8 }
 0x25b   : > { %723 = vrot.lane.b32.xlu2 %v1880_v50, %s1564_s29 }
 0x261   : > { %775 = vrot.lane.b32.xlu1 %v1858_v31, %s1566_s6  ;;  %629 = vrot.lane.b32.xlu0 %v1896_v51, %s1563_s28 }
 0x263   : > { %1490 = vrot.lane.b32.xlu2 %v1489_v52, %s1567_s7  ;;  %v1914_v55 = vpop.permute.xlu2 %621 }
 0x269   : > { %1480 = vrot.lane.b32.xlu1 %v1866_v46, %s1568_s8  ;;  %677 = vrot.lane.b32.xlu0 %v1896_v51, %s1565_s30 }
 0x26b   : > { %733 = vrot.lane.b32.xlu2 %v1910_v54, %s1564_s29  ;;  %v1924_v58 = vpop.permute.xlu2 %669 }
 0x271   : > { %773 = vrot.lane.b32.xlu1 %v1896_v51, %s1566_s6  ;;  %1485 = vrot.lane.b32.xlu0 %v1489_v52, %s1569_s9 }
 0x273   : > { %633 = vrot.lane.b32.xlu2 %v1920_v57, %s1563_s28  ;;  %v1935_v29 = vpop.permute.xlu2 %765 }
 0x279   : > { %771 = vrot.lane.b32.xlu0 %v1880_v50, %s1566_s6  ;;  %637 = vrot.lane.b32.xlu1 %v1910_v54, %s1563_s28 }
 0x27b   : > { %681 = vrot.lane.b32.xlu2 %v1920_v57, %s1565_s30  ;;  %v718_v61 = vpop.permute.xlu2 %717 }
 0x281   : > { %725 = vrot.lane.b32.xlu0 %v1896_v51, %s1564_s29  ;;  %685 = vrot.lane.b32.xlu1 %v1910_v54, %s1565_s30 }
 0x283   : > { %1500 = vrot.lane.b32.xlu2 %v1499_v60, %s1569_s9 }
 0x289   : > { %781 = vrot.lane.b32.xlu1 %v1910_v54, %s1566_s6  ;;  %635 = vrot.lane.b32.xlu0 %v1933_v59, %s1563_s28 }
 0x28b   : > { %729 = vrot.lane.b32.xlu2 %v1920_v57, %s1564_s29 }
 0x28d   : > { %v1955_v62 = vpop.permute.xlu2 %1470 }
 0x28e   : > { %2441 = vst [vmem:[#allocation10_spill] sm:$0xff] %v1955_v62 }
 0x291   : > { %1495 = vrot.lane.b32.xlu1 %v1494_v7, %s1568_s8  ;;  %683 = vrot.lane.b32.xlu0 %v1933_v59, %s1565_s30 }
 0x293   : > { %1510 = vrot.lane.b32.xlu2 %v1499_v60, %s1567_s7 }
 0x295   : > { %v1965_v4 = vpop.permute.xlu2 %1475 }
 0x296   : > { %v1478_v26 = vunpack.i.h.bf16 %v1965_v4 }
 0x299   : > { %779 = vrot.lane.b32.xlu1 %v1933_v59, %s1566_s6  ;;  %777 = vrot.lane.b32.xlu0 %v1920_v57, %s1566_s6 }
 0x29b   : > { %1515 = vrot.lane.b32.xlu2 %v1514_v2, %s1569_s9 }
 0x29d   : > { %v1971_v9 = vpop.permute.xlu2 %727 }
 0x2a1   : > { %643 = vrot.lane.b32.xlu1 %v604_v1, %s1563_s28  ;;  %731 = vrot.lane.b32.xlu0 %v1933_v59, %s1564_s29 }
 0x2a3   : > { %v722_v6 = vpop.permute.xlu0 %721  ;;  %v626_v8 = vpop.permute.xlu1 %625  ;;  %691 = vrot.lane.b32.xlu2 %v604_v1, %s1565_s30 }
 0x2a5   : > { %v628_v14 = vpop.permute.xlu2 %627 }
 0x2a9   : > { %787 = vrot.lane.b32.xlu1 %v604_v1, %s1566_s6  ;;  %1505 = vrot.lane.b32.xlu0 %v1499_v60, %s1568_s8 }
 0x2ab   : > { %v674_v11 = vpop.permute.xlu1 %673  ;;  %v1978_v12 = vpop.permute.xlu0 %623  ;;  %639 = vrot.lane.b32.xlu2 %v1976_v10, %s1563_s28 }
 0x2ac   : > { %v1984_v13 = vsel %vm282_vm2, %v1978_v12, %v626_v8 }
 0x2ad   : > { %v676_v20 = vpop.permute.xlu2 %675 }
 0x2b1   : > { %739 = vrot.lane.b32.xlu1 %v604_v1, %s1564_s29  ;;  %1525 = vrot.lane.b32.xlu0 %v1514_v2, %s1567_s7  ;;  %v1477_v2 = vunpack.i.l.bf16 %v1965_v4 }
 0x2b3   : > { %v770_v15 = vpop.permute.xlu1 %769  ;;  %v1988_v16 = vpop.permute.xlu0 %671  ;;  %687 = vrot.lane.b32.xlu2 %v1976_v10, %s1565_s30 }
 0x2b4   : > { %v1994_v17 = vsel %vm295_vm1, %v1988_v16, %v674_v11 }
 0x2b5   : > { %v724_v39 = vpop.permute.xlu2 %723 }
 0x2b9   : > { %1520 = vrot.lane.b32.xlu1 %v1519_v18, %s1568_s8  ;;  %641 = vrot.lane.b32.xlu0 %v1998_v19, %s1563_s28 }
 0x2bb   : > { %v2003_v21 = vpop.permute.xlu1 %1460  ;;  %v2005_v24 = vpop.permute.xlu0 %767  ;;  %735 = vrot.lane.b32.xlu2 %v1976_v10, %s1564_s29 }
 0x2bc   : > { %v2396_v30 = vunpack.i.h.bf16 %v2003_v21  ;;  %v2013_v32 = vsel %vm321_vm5, %v2005_v24, %v770_v15 }
 0x2bd   : > { %v2040_v33 = vpop.permute.xlu2 %1490 }
 0x2be   : > { %v2018_v35 = vsel %vm2446_vm8, %v2396_v30, %v1478_v26  ;;  %2451 = vst [vmem:[#allocation15_spill] sm:$0xff] %v2040_v33 }
 0x2c1   : > { %1530 = vrot.lane.b32.xlu1 %v1529_v5, %s1569_s9  ;;  %689 = vrot.lane.b32.xlu0 %v1998_v19, %s1565_s30 }
 0x2c3   : > { %v632_v37 = vpop.permute.xlu1 %631  ;;  %v720_v38 = vpop.permute.xlu0 %719  ;;  %835 = vrot.lane.b32.xlu2 %v604_v1, %s1562_s27 }
 0x2c4   : > { %v2027_v22 = vsel %vm2447_vm14, %v718_v61, %v720_v38  ;;  %v2030_v27 = vsel %vm2448_vm15, %v720_v38, %v722_v6  ;;  %v1127_v61 = vld [vmem:[%s2387_s4] sm:$0x7]  ;;  %vm2458_vm14 = vmmov %vm2446_vm8 }
 0x2c5   : > { %2449 = vst [vmem:[#allocation13_spill] sm:$0xff] %v2030_v27  ;;  %vm2459_vm15 = vmmov %vm2446_vm8 }
 0x2c9   : > { %785 = vrot.lane.b32.xlu1 %v1998_v19, %s1566_s6  ;;  %783 = vrot.lane.b32.xlu0 %v1976_v10, %s1566_s6 }
 0x2cb   : > { %v680_v28 = vpop.permute.xlu1 %679  ;;  %v2036_v34 = vpop.permute.xlu0 %1465  ;;  %1535 = vrot.lane.b32.xlu2 %v1866_v46, %s1567_s7 }
 0x2cc   : > { %2450 = vst [vmem:[#allocation14_spill] sm:$0xff] %v2036_v34  ;;  %v2054_v46 = vpop.permute.xlu2 %733  ;;  %v2395_v53 = vunpack.i.h.bf16 %v2036_v34 }
 0x2d1   : > { %829 = vrot.lane.b32.xlu1 %v1910_v54, %s1562_s27  ;;  %827 = vrot.lane.b32.xlu0 %v1933_v59, %s1562_s27 }
 0x2d3   : > { %v776_v36 = vpop.permute.xlu1 %775  ;;  %v630_v44 = vpop.permute.xlu0 %629  ;;  %815 = vrot.lane.b32.xlu2 %v1845_v43, %s1562_s27 }
 0x2d4   : > { %v2049_v25 = vsel %vm282_vm2, %v628_v14, %v630_v44  ;;  %v2052_v23 = vsel %vm282_vm2, %v630_v44, %v632_v37  ;;  %v634_v7 = vpop.permute.xlu2 %633 }
 0x2d9   : > { %823 = vrot.lane.b32.xlu1 %v1858_v31, %s1562_s27  ;;  %737 = vrot.lane.b32.xlu0 %v1998_v19, %s1564_s29 }
 0x2db   : > { %v1481_v47 = vpop.permute.xlu1 %1480  ;;  %v678_v52 = vpop.permute.xlu0 %677  ;;  %825 = vrot.lane.b32.xlu2 %v1920_v57, %s1562_s27 }
 0x2dc   : > { %v1483_v54 = vunpack.i.h.bf16 %v1481_v47  ;;  %v2064_v56 = vsel %vm295_vm1, %v676_v20, %v678_v52  ;;  %v2067_v60 = vsel %vm295_vm1, %v678_v52, %v680_v28  ;;  %v682_v15 = vpop.permute.xlu2 %681  ;;  %v1482_v52 = vunpack.i.l.bf16 %v1481_v47 }
 0x2de   : > { %v2072_v31 = vsel %vm350_vm10, %v2395_v53, %v1483_v54 }
 0x2df   : > { %2452 = vst [vmem:[#allocation16_spill] sm:$0xff] %v2072_v31 }
 0x2e1   : > { %1545 = vrot.lane.b32.xlu1 %v1529_v5, %s1567_s7  ;;  %1540 = vrot.lane.b32.xlu0 %v1529_v5, %s1568_s8  ;;  %s224_s7 = scalar_lea.vmem %s2388_s5, %s1353_s20 }
 0x2e3   : > { %v774_v63 = vpop.permute.xlu1 %773  ;;  %v2079_v1 = vpop.permute.xlu0 %1485  ;;  %1130 = vperm.xlu2 %1457, %v1127_v61  }
 0x2e4   : > { %v2397_v3 = vunpack.i.h.bf16 %v2079_v1  ;;  %v2084_v6 = vsel %vm321_vm5, %v774_v63, %v776_v36  ;;  %v1501_v5 = vpop.permute.xlu2 %1500  ;;  %v1487_v62 = vunpack.i.l.bf16 %v2079_v1 }
 0x2e6   : > { %v2089_v8 = vsel %vm2453_vm9, %v2397_v3, %v1477_v2  ;;  %vm2461_vm9 = vmmov %vm2446_vm8 }
 0x2e9   : > { %833 = vrot.lane.b32.xlu1 %v1998_v19, %s1562_s27  ;;  %821 = vrot.lane.b32.xlu0 %v1896_v51, %s1562_s27  ;;  %v1503_v51 = vunpack.i.h.bf16 %v1501_v5 }
 0x2eb   : > { %v772_v11 = vpop.permute.xlu0 %771  ;;  %v638_v14 = vpop.permute.xlu1 %637 }
 0x2ec   : > { %v2096_v4 = vsel %vm321_vm5, %v772_v11, %v774_v63  ;;  %v2120_v36 = vpop.permute.xlu2 %729 }
 0x2f1   : > { %831 = vrot.lane.b32.xlu1 %v1976_v10, %s1562_s27  ;;  %817 = vrot.lane.b32.xlu0 %v1848_v45, %s1562_s27 }
 0x2f3   : > { %v2102_v18 = vpop.permute.xlu0 %725  ;;  %v686_v20 = vpop.permute.xlu1 %685 }
 0x2f4   : > { %v2106_v26 = vsel %vm2454_vm3, %v724_v39, %v2102_v18  ;;  %v2130_v63 = vpop.permute.xlu2 %1510 }
 0x2f9   : > { %813 = vrot.lane.b32.xlu1 %v1834_v42, %s1562_s27  ;;  %819 = vrot.lane.b32.xlu0 %v1880_v50, %s1562_s27  ;;  %v1502_v50 = vunpack.i.l.bf16 %v1501_v5 }
 0x2fb   : > { %v2112_v37 = vpop.permute.xlu1 %781  ;;  %v636_v38 = vpop.permute.xlu0 %635 }
 0x2fc   : > { %v2115_v28 = vsel %vm282_vm2, %v634_v7, %v636_v38  ;;  %v2118_v45 = vsel %vm282_vm2, %v636_v38, %v638_v14  ;;  %v1516_v38 = vpop.permute.xlu2 %1515 }
 0x2fd   : > { %v1517_v59 = vunpack.i.l.bf16 %v1516_v38 }
 0x303   : > { %v2122_v39 = vpop.permute.xlu1 %1495  ;;  %v684_v44 = vpop.permute.xlu0 %683 }
 0x304   : > { %2455 = vst [vmem:[#allocation17_spill] sm:$0xff] %v2122_v39  ;;  %v2399_v54 = vunpack.i.l.bf16 %v2122_v39  ;;  %v692_v47 = vpop.permute.xlu2 %691  ;;  %v1518_v39 = vunpack.i.h.bf16 %v1516_v38  ;;  %v697_v5 = vsel %vm295_vm1, %v682_v15, %v684_v44  ;;  %v2471_v38 = vld [vmem:[#allocation10_spill] sm:$0xff] }
 0x306   : > { %v2128_v61 = vsel %vm350_vm10, %v2399_v54, %v1482_v52 }
 0x307   : > { %2456 = vst [vmem:[#allocation18_spill] sm:$0xff] %v2128_v61 }
 0x30b   : > { %v2132_v7 = vpop.permute.xlu1 %779  ;;  %v2134_v2 = vpop.permute.xlu0 %777 }
 0x30c   : > { %v640_v52 = vpop.permute.xlu2 %639 }
 0x313   : > { %v644_v11 = vpop.permute.xlu1 %643  ;;  %v2136_v14 = vpop.permute.xlu0 %731 }
 0x314   : > { %v688_v42 = vpop.permute.xlu2 %687 }
 0x31b   : > { %v788_v53 = vpop.permute.xlu1 %787  ;;  %v2138_v30 = vpop.permute.xlu0 %1505 }
 0x31c   : > { %v1507_v15 = vunpack.i.l.bf16 %v2138_v30 }
 0x323   : > { %v2140_v3 = vpop.permute.xlu1 %739  ;;  %v2142_v0 = vpop.permute.xlu0 %1525 }
 0x32b   : > { %v2144_v54 = vpop.permute.xlu1 %1520  ;;  %v642_v43 = vpop.permute.xlu0 %641 }
 0x333   : > { %v1531_v57 = vpop.permute.xlu1 %1530  ;;  %v690_v19 = vpop.permute.xlu0 %689 }
 0x334   : > { %v1533_v10 = vunpack.i.h.bf16 %v1531_v57  ;;  %v1532_v31 = vunpack.i.l.bf16 %v1531_v57  ;;  %v699_v61 = vsel %vm295_vm1, %v688_v42, %v690_v19  ;;  %v700_v34 = vsel %vm295_vm1, %v690_v19, %v692_v47 }
 0x335   : > { %1355 = vmatpush.msk.msra.mxu0 %vm1699_vm6, %v699_v61  ;;  %1379 = vmatpush.msk.msrb.mxu1 %vm1772_vm13, %v700_v34  ;;  %v698_v42 = vsel %vm295_vm1, %v684_v44, %v686_v20  ;;  %v1462_v57 = vunpack.i.l.bf16 %v2003_v21  ;;  %v1025_v19 = vsel %vm2458_vm14, %v1502_v50, %v1503_v51  ;;  %v1522_v20 = vunpack.i.l.bf16 %v2144_v54 }
 0x336   : > { %v1027_v33 = vsel %vm2457_vm12, %v1532_v31, %v1533_v10  ;;  %v1028_v27 = vsel %vm2446_vm8, %v1533_v10, %v1517_v59  ;;  %v1026_v59 = vsel %vm2459_vm15, %v1503_v51, %v1518_v39  ;;  %v693_v10 = vsel %vm295_vm1, %v1924_v58, %v1988_v16  ;;  %vm2463_vm1 = vmmov %vm2446_vm8 }
 0x337   : > { %1356 = vmatpush.msk.msra.mxu0 %vm1699_vm6, %v697_v5  ;;  %1166 = vmatpush.msra.mxu3 %v1027_v33  ;;  %v651_v51 = vsel %vm282_vm2, %v640_v52, %v642_v43  ;;  %v2462_v58 = vunpack.i.h.bf16 %v2003_v21  ;;  %v1473_v47 = vunpack.i.h.bf16 %v2471_v38  ;;  %v2472_v52 = vld [vmem:[#allocation17_spill] sm:$0xff]  ;;  %vm2477_vm14 = vcmask 769024  }
 0x338   : > { %1380 = vmatpush.msk.msrb.mxu1 %vm1772_vm13, %v698_v42  ;;  %1226 = vmatpush.msrb.mxu2 %v1028_v27  ;;  %v2460_v27 = vunpack.i.h.bf16 %v2079_v1  ;;  %v1498_v5 = vunpack.i.h.bf16 %v2472_v52 }
 0x339   : > { %1357 = vmatpush.msk.msra.mxu0 %vm1699_vm6, %v2064_v56  ;;  %1167 = vmatpush.msra.mxu3 %v1025_v19  ;;  %v1021_v16 = vsel %vm2463_vm1, %v1462_v57, %v2462_v58  ;;  %v736_v56 = vpop.permute.xlu2 %735  ;;  %v1472_v57 = vunpack.i.l.bf16 %v2471_v38  ;;  %vm1143_vm1 = vcmask 261120  }
 0x33a   : > { %1381 = vmatpush.msk.msrb.mxu1 %vm1772_vm13, %v2067_v60  ;;  %1227 = vmatpush.msrb.mxu2 %v1026_v59  ;;  %v1023_v50 = vsel %vm2461_vm9, %v1487_v62, %v2460_v27  ;;  %v652_v62 = vsel %vm282_vm2, %v642_v43, %v644_v11  ;;  %v1054_v43 = vld [vmem:[%s2386_s3 + $0x8] sm:$0x7]  ;;  %v645_v60 = vsel %vm282_vm2, %v1914_v55, %v1978_v12  ;;  %vm2464_vm2 = vmmov %vm2454_vm3 }
 0x33b   : > { %v786_v34 = vpop.permute.xlu1 %785  ;;  %v784_v33 = vpop.permute.xlu0 %783  ;;  %1358 = vmatpush.msk.msra.mxu0 %vm1699_vm6, %v693_v10  ;;  %1168 = vmatpush.msra.mxu3 %v1023_v50  ;;  %1137 = vst [vmem:[#allocation1 + $0x10] ss:$2 sm:$0xff] %v1054_v43  ;;  %v789_v55 = vsel %vm321_vm5, %v1935_v29, %v2005_v24  ;;  %vm2465_vm3 = vmmov %vm2464_vm2 }
 0x33c   : > { %1382 = vmatpush.msk.msrb.mxu1 %vm1772_vm13, %v1994_v17  ;;  %1228 = vmatpush.msrb.mxu2 %v2089_v8  ;;  %v795_v17 = vsel %vm321_vm5, %v784_v33, %v786_v34  ;;  %v796_v21 = vsel %vm321_vm5, %v786_v34, %v788_v53  ;;  %v794_v53 = vsel %vm321_vm5, %v2132_v7, %v2112_v37  ;;  %vm2467_vm12 = vmmov %vm2464_vm2  ;;  %v1508_v8 = vunpack.i.h.bf16 %v2138_v30  ;;  %v2470_v30 = vld [vmem:[#allocation15_spill] sm:$0xff] }
 0x33d   : > { %1359 = vmatpush.msk.msra.mxu0 %vm1681_vm4, %v651_v51  ;;  %1169 = vmatpush.msra.mxu3 %v1021_v16  ;;  %v746_v24 = vsel %vm2467_vm12, %v2136_v14, %v2054_v46  ;;  %vm2468_vm8 = vmmov %vm2464_vm2  ;;  %v1512_v46 = vunpack.i.l.bf16 %v2130_v63  ;;  %v1493_v44 = vunpack.i.h.bf16 %v2470_v30  ;;  %v1492_v61 = vunpack.i.l.bf16 %v2470_v30 }
 0x33e   : > { %1383 = vmatpush.msk.msrb.mxu1 %vm1705_vm7, %v652_v62  ;;  %1229 = vmatpush.msrb.mxu2 %v2018_v35  ;;  %v793_v35 = vsel %vm321_vm5, %v2134_v2, %v2132_v7  ;;  %vm2466_vm5 = vmmov %vm2464_vm2  ;;  %v1523_v7 = vunpack.i.h.bf16 %v2144_v54  ;;  %v897_v54 = vsel %vm350_vm10, %v1507_v15, %v1508_v8  ;;  %v898_v27 = vsel %vm350_vm10, %v1508_v8, %v1498_v5  ;;  %v2485_v8 = vld [vmem:[#allocation6_spill] sm:$0xff]  ;;  %v2494_v5 = vld [vmem:[#allocation3_spill] sm:$0xff] }
 0x33f   : > { %1360 = vmatpush.msk.msra.mxu0 %vm1681_vm4, %v2115_v28  ;;  %1367 = vmatpush.msk.msra.mxu3 %vm1699_vm6, %v795_v17  ;;  %v745_v29 = vsel %vm2466_vm5, %v2120_v36, %v2136_v14  ;;  %v2474_v34 = vunpack.i.l.bf16 %v2472_v52  ;;  %v959_v51 = vsel %vm376_vm11, %v1492_v61, %v1493_v44  ;;  %v2475_v17 = vld [vmem:[#allocation18_spill] sm:$0xff] }
 0x340   : > { %1384 = vmatpush.msk.msrb.mxu1 %vm1705_vm7, %v2118_v45  ;;  %1391 = vmatpush.msk.msrb.mxu2 %vm1772_vm13, %v796_v21 }
 0x341   : > { %1361 = vmatpush.msk.msra.mxu0 %vm1681_vm4, %v2049_v25  ;;  %1368 = vmatpush.msk.msra.mxu3 %vm1699_vm6, %v793_v35  ;;  %v2249_v12 = vpop.permute.xlu2 %835  ;;  %v895_v33 = vsel %vm350_vm10, %v1523_v7, %v2474_v34  ;;  %v1139_v35 = vld.sshfl [vmem:[#allocation1 + $0x8] sm:$0xff pattern:$0x75316420] }
 0x342   : > { %1385 = vmatpush.msk.msrb.mxu1 %vm1705_vm7, %v2052_v23  ;;  %1392 = vmatpush.msk.msrb.mxu2 %vm1772_vm13, %v794_v53 }
 0x343   : > { %v2226_v31 = vpop.permute.xlu1 %829  ;;  %v2228_v25 = vpop.permute.xlu0 %827  ;;  %1362 = vmatpush.msk.msra.mxu0 %vm1681_vm4, %v645_v60  ;;  %1369 = vmatpush.msk.msra.mxu3 %vm1699_vm6, %v2096_v4  ;;  %v1527_v4 = vunpack.i.l.bf16 %v2142_v0 }
 0x344   : > { %1386 = vmatpush.msk.msrb.mxu1 %vm1705_vm7, %v1984_v13  ;;  %1393 = vmatpush.msk.msrb.mxu2 %vm1772_vm13, %v2084_v6 }
 0x345   : > { %1370 = vmatpush.msk.msra.mxu3 %vm1699_vm6, %v789_v55 }
 0x346   : > { %1394 = vmatpush.msk.msrb.mxu2 %vm1772_vm13, %v2013_v32  ;;  %v744_v32 = vsel %vm2468_vm8, %v2102_v18, %v1971_v9 }
 0x349   : > { %v1536_v37 = vpop.permute.xlu2 %1535 }
 0x34a   : > { %v1537_v42 = vunpack.i.l.bf16 %v1536_v37  ;;  %v1538_v10 = vunpack.i.h.bf16 %v1536_v37 }
 0x34b   : > { %v2251_v23 = vpop.permute.xlu1 %823  ;;  %v738_v13 = vpop.permute.xlu0 %737 }
 0x34c   : > { %v747_v1 = vsel %vm2464_vm2, %v736_v56, %v738_v13  ;;  %v748_v6 = vsel %vm2465_vm3, %v738_v13, %v2140_v3  ;;  %v1513_v3 = vunpack.i.h.bf16 %v2130_v63  ;;  %v1528_v63 = vunpack.i.h.bf16 %v2142_v0  ;;  %v2473_v0 = vld [vmem:[#allocation14_spill] sm:$0xff]  ;;  %v2478_v13 = vld [vmem:[#allocation16_spill] sm:$0xff] }
 0x34d   : > { %1371 = vmatpush.msk.msra.mxu3 %vm1681_vm4, %v747_v1  ;;  %1395 = vmatpush.msk.msrb.mxu2 %vm1705_vm7, %v748_v6  ;;  %v1467_v19 = vunpack.i.l.bf16 %v2473_v0  ;;  %v960_v62 = vsel %vm376_vm11, %v1493_v44, %v1537_v42  ;;  %v2476_v21 = vunpack.i.h.bf16 %v2473_v0  ;;  %v957_v56 = vsel %vm376_vm11, %v1472_v57, %v1473_v47  ;;  %v2479_v1 = vld [vmem:[#allocation11_spill] sm:$0xff]  ;;  %v2480_v6 = vld [vmem:[#allocation12_spill] sm:$0xff] }
 0x34e   : > { %v961_v59 = vsel %vm376_vm11, %v1512_v46, %v1513_v3  ;;  %v962_v50 = vsel %vm376_vm11, %v1513_v3, %v1528_v63  ;;  %v958_v53 = vsel %vm376_vm11, %v1473_v47, %v1538_v10 }
 0x34f   : > { %1372 = vmatpush.msk.msra.mxu3 %vm1681_vm4, %v745_v29  ;;  %1396 = vmatpush.msk.msrb.mxu2 %vm1705_vm7, %v746_v24  ;;  %v893_v43 = vsel %vm350_vm10, %v1467_v19, %v2476_v21  ;;  %v2482_v29 = vld [vmem:[#allocation8_spill] sm:$0xff]  ;;  %v2483_v24 = vld [vmem:[#allocation9_spill] sm:$0xff] }
 0x351   : > { %1373 = vmatpush.msk.msra.mxu3 %vm1681_vm4, %v2106_v26  ;;  %1397 = vmatpush.msk.msrb.mxu2 %vm1705_vm7, %v744_v32  ;;  %v2469_v26 = vld [vmem:[#allocation13_spill] sm:$0xff]  ;;  %v816_v55 = vpop.permute.xlu2 %815 }
 0x353   : > { %v1546_v9 = vpop.permute.xlu1 %1545  ;;  %v1541_v18 = vpop.permute.xlu0 %1540  ;;  %1374 = vmatpush.msk.msra.mxu3 %vm1681_vm4, %v2027_v22  ;;  %1398 = vmatpush.msk.msrb.mxu2 %vm1705_vm7, %v2469_v26 }
 0x354   : > { %v1548_v28 = vunpack.i.h.bf16 %v1546_v9  ;;  %v1547_v45 = vunpack.i.l.bf16 %v1546_v9  ;;  %v1543_v36 = vunpack.i.h.bf16 %v1541_v18  ;;  %v1542_v39 = vunpack.i.l.bf16 %v1541_v18  ;;  %v1140_v9 = vld.sshfl [vmem:[#allocation1 + $0x10] sm:$0xff pattern:$0x75316420]  ;;  %v2490_v18 = vld [vmem:[#allocation5_spill] sm:$0xff] }
 0x356   : > { %v899_v2 = vsel %vm350_vm10, %v1542_v39, %v1543_v36  ;;  %v963_v22 = vsel %vm376_vm11, %v1547_v45, %v1548_v28  ;;  %v900_v11 = vsel %vm350_vm10, %v1543_v36, %v1522_v20  ;;  %v964_v14 = vsel %vm376_vm11, %v1548_v28, %v1527_v4  ;;  %vm2481_vm10 = vmmov %vm2477_vm14  ;;  %v1138_v4 = vld.sshfl [vmem:[#allocation1] sm:$0xff pattern:$0x75316420]  ;;  %v2488_v20 = vld [vmem:[#allocation4_spill] sm:$0xff] }
 0x357   : > { %1154 = vmatpush.msra.mxu0 %v899_v2  ;;  %1178 = vmatpush.msra.mxu3 %v963_v22  ;;  %vm2484_vm11 = vmmov %vm2481_vm10 }
 0x358   : > { %1214 = vmatpush.msrb.mxu1 %v900_v11  ;;  %1238 = vmatpush.msrb.mxu2 %v964_v14  ;;  %vm2487_vm15 = vmmov %vm2481_vm10 }
 0x359   : > { %1155 = vmatpush.msra.mxu0 %v897_v54  ;;  %1179 = vmatpush.msra.mxu3 %v961_v59  ;;  %vm2489_vm9 = vmmov %vm2481_vm10  ;;  %v826_v26 = vpop.permute.xlu2 %825 }
 0x35a   : > { %1215 = vmatpush.msrb.mxu1 %v898_v27  ;;  %1239 = vmatpush.msrb.mxu2 %v962_v50 }
 0x35b   : > { %v834_v58 = vpop.permute.xlu1 %833  ;;  %v822_v16 = vpop.permute.xlu0 %821  ;;  %1156 = vmatpush.msra.mxu0 %v895_v33  ;;  %1180 = vmatpush.msra.mxu3 %v959_v51 }
 0x35c   : > { %1216 = vmatpush.msrb.mxu1 %v2475_v17  ;;  %1240 = vmatpush.msrb.mxu2 %v960_v62  ;;  %v844_v60 = vsel %vm2477_vm14, %v834_v58, %v2249_v12  ;;  %v842_v12 = vsel %vm2481_vm10, %v2228_v25, %v2226_v31  ;;  %v840_v32 = vsel %vm2484_vm11, %v822_v16, %v2251_v23  ;;  %v2486_v31 = vld [vmem:[#allocation7_spill] sm:$0xff] }
 0x35d   : > { %1157 = vmatpush.msra.mxu0 %v893_v43  ;;  %1181 = vmatpush.msra.mxu3 %v957_v56 }
 0x35e   : > { %1217 = vmatpush.msrb.mxu1 %v2478_v13  ;;  %1241 = vmatpush.msrb.mxu2 %v958_v53 }
 0x35f   : > { %1182 = vmatmul.f32.vlgmr.msra.gmra.mxu3 %v1139_v35  ;;  %1363 = vmatpush.msk.msra.mxu0 %vm1699_vm6, %v2479_v1 }
 0x360   : > { %1399 = vmatpush.msk.msrb.mxu3 %vm1705_vm7, %v844_v60  ;;  %1387 = vmatpush.msk.msrb.mxu1 %vm1772_vm13, %v2480_v6 }
 0x361   : > { %1364 = vmatpush.msk.msra.mxu0 %vm1699_vm6, %v2482_v29  ;;  %1242 = vmatmul.f32.vlgmr.msrb.gmra.mxu2 %v1139_v35 }
 0x362   : > { %1400 = vmatpush.msk.msrb.mxu3 %vm1705_vm7, %v842_v12  ;;  %1388 = vmatpush.msk.msrb.mxu1 %vm1772_vm13, %v2483_v24 }
 0x363   : > { %v832_v3 = vpop.permute.xlu1 %831  ;;  %v818_v46 = vpop.permute.xlu0 %817  ;;  %1365 = vmatpush.msk.msra.mxu0 %vm1699_vm6, %v2485_v8 }
 0x364   : > { %1401 = vmatpush.msk.msrb.mxu3 %vm1705_vm7, %v840_v32  ;;  %1389 = vmatpush.msk.msrb.mxu1 %vm1772_vm13, %v2486_v31  ;;  %v838_v15 = vsel %vm2487_vm15, %v816_v55, %v818_v46  ;;  %v843_v23 = vsel %vm2489_vm9, %v832_v3, %v834_v58 }
 0x365   : > { %1366 = vmatpush.msk.msra.mxu0 %vm1699_vm6, %v2488_v20  ;;  %vm2491_vm6 = vmmov %vm2489_vm9 }
 0x366   : > { %1390 = vmatpush.msk.msrb.mxu1 %vm1772_vm13, %v2490_v18  ;;  %1402 = vmatpush.msk.msrb.mxu3 %vm1705_vm7, %v838_v15  ;;  %v841_v48 = vsel %vm2491_vm6, %v826_v26, %v2228_v25  ;;  %vm2492_vm13 = vmmov %vm2491_vm6  ;;  %v1131_v25 = vpop.permute.xlu2 %1130 }
 0x367   : > { %1162 = vmatmul.f32.vlgmr.msra.gmra.mxu0 %v1138_v4  ;;  %1222 = vmatmul.f32.vlgmr.msrb.gmra.mxu1 %v1138_v4  ;;  %vm2493_vm7 = vmmov %vm2491_vm6 }
 0x368   : > { %1375 = vmatpush.msk.msrb.mxu0 %vm1681_vm4, %v843_v23  ;;  %1350 = vmatmul.msk.f32.vlgmr.msrb.gmra.mxu3 %vm1143_vm1, %v1140_v9 }
 0x36a   : > { %1376 = vmatpush.msk.msrb.mxu0 %vm1681_vm4, %v841_v48 }
 0x36b   : > { %v814_v37 = vpop.permute.xlu1 %813  ;;  %v820_v41 = vpop.permute.xlu0 %819 }
 0x36c   : > { %v839_v28 = vsel %vm2492_vm13, %v820_v41, %v822_v16  ;;  %v837_v49 = vsel %vm2493_vm7, %v814_v37, %v816_v55 }
 0x36d   : > { %1377 = vmatpush.msk.msrb.mxu0 %vm1681_vm4, %v839_v28 }
 0x36f   : > { %1378 = vmatpush.msk.msrb.mxu0 %vm1681_vm4, %v837_v49 }
 0x370   : > { %1349 = vmatmul.msk.f32.vlgmr.msrb.gmra.mxu0 %vm1143_vm1, %v1140_v9 }
 0x3e2   : > { %v1183_v45 = vpop.f32.mrf.mxu3 }
 0x3e4   : > { %v1223_v36 = vpop.f32.mrf.mxu1  ;;  %v1163_v39 = vpop.f32.mrf.mxu0 }
 0x3e5   : > { %v1224_v30 = vadd.f32 %v1223_v36, %v1131_v25  ;;  %v1243_v44 = vpop.f32.mrf.mxu2  ;;  %v1164_v61 = vadd.f32 %v1163_v39, %v1131_v25 }
 0x3e7   : > { %v1244_v63 = vadd.f32 %v1243_v44, %v1224_v30  ;;  %v1184_v22 = vadd.f32 %v1183_v45, %v1164_v61 }
 0x3eb   : > { %v1263_v7 = vpop.f32.mrf.mxu3 }
 0x3ec   : > { %v1264_v2 = vadd.f32 %v1263_v7, %v1244_v63 }
 0x3ed   : > { %v1203_v11 = vpop.f32.mrf.mxu0 }
 0x3ee   : > { %1549 = vtanh.f32 %v1264_v2  ;;  %v1204_v14 = vadd.f32 %v1203_v11, %v1184_v22 }
 0x3f0   : > { %1551 = vtanh.f32 %v1204_v14 }
 0x3f4   : > { %v1550_v40 = vpop.eup %1549 }
 0x3f5   : > { %v1270_v38 = vrot.slane %v1550_v40, 4 }
 0x3f6   : > { %v1552_v47 = vpop.eup %1551 }
 0x3f7   : > { %v1271_v52 = vsel %vm416_vm0, %v1552_v47, %v1270_v38 }
 0x3f8   : > { %v1273_v42 = vadd.f32 %v1271_v52, %v2494_v5 }
 0x3fa   : > { %1274 = vst [vmem:[%s224_s7] sm:$0x77] %v1273_v42 }
 0x3fb PF: > { %s15_s18 = sadd.s32 1, %s1559_s18  }
 0x3fc   : > { %p12_p4 = scmp.ge.s32.totalorder %s15_s18, 4  }
 0x3fe   :  { %14 = sbr.rel (!%p12_p4) target bundleno = 1 (0x1), region = 71 }

</bundles_post_ra>
